<compile_context>
chip_gen: v6e
topology: v6e:2x2x1
jax: 0.10.0
libtpu: 0.0.40
codegen_flags: <defaults>
</compile_context>

<pallas_src>
import jax
import jax.numpy as jnp
from jax.experimental import pallas as pl
from jax.experimental.pallas import tpu as pltpu


HIDDEN_PAD = 128  # logical hidden = 50, padded to a full lane width (zero cols/rows)


def _round_up(x, m):
    return ((x + m - 1) // m) * m


def _generator_mlp_kernel(z_ref, c_ref, w1z_ref, w1c_ref, b1_ref, w2_ref, b2_ref, o_ref):
    # Hidden layer with fused concat: h = z @ W1_z + cond @ W1_c + b1, then ReLU.
    h = jnp.dot(z_ref[...], w1z_ref[...], preferred_element_type=jnp.float32)
    h = h + jnp.dot(c_ref[...], w1c_ref[...], preferred_element_type=jnp.float32)
    h = jnp.maximum(h + b1_ref[...], 0.0)            # b1 is (1, hidden) -> broadcast over batch
    # Output layer: y = h @ W2 + b2.
    y = jnp.dot(h.astype(w2_ref.dtype), w2_ref[...], preferred_element_type=jnp.float32)
    o_ref[...] = (y + b2_ref[...]).astype(o_ref.dtype)


def prepare_generator_params(raw, noise_dim, hidden_pad=HIDDEN_PAD):
    """One-time prep: cast to f32, split W1 along the (z | cond) input rows, and pad the
    hidden dim with zeros (ReLU(0)=0 and the padded rows of W2 are zero, so results are
    bit-identical to the unpadded math)."""
    w1 = jnp.asarray(raw["w1"], jnp.float32)          # [noise_dim + cond_dim, 50]
    b1 = jnp.asarray(raw["b1"], jnp.float32)          # [50]
    w2 = jnp.asarray(raw["w2"], jnp.float32)          # [50, out]
    b2 = jnp.asarray(raw["b2"], jnp.float32)          # [out]
    hidden = w1.shape[1]
    pad = hidden_pad - hidden
    w1 = jnp.pad(w1, ((0, 0), (0, pad)))
    b1 = jnp.pad(b1, ((0, pad),))
    w2 = jnp.pad(w2, ((0, pad), (0, 0)))
    return {
        "w1_z": w1[:noise_dim],                       # [noise_dim, hidden_pad]
        "w1_c": w1[noise_dim:],                       # [cond_dim,  hidden_pad]
        "b1": b1.reshape(1, -1),                      # [1, hidden_pad]
        "w2": w2,                                     # [hidden_pad, out]
        "b2": b2.reshape(1, -1),                      # [1, out]
    }


def generator_forward(z, cond_info, params, *, block_batch=2048):
    """Pallas equivalent of Generator.forward.

    z:          [B, noise_dim]
    cond_info:  [B, cond_dim]
    params:     output of prepare_generator_params (pre-split / pre-padded / f32)
    returns     [B, output_dim] float32
    """
    w1z, w1c, b1, w2, b2 = (params["w1_z"], params["w1_c"], params["b1"],
                            params["w2"], params["b2"])

    batch = z.shape[0]
    noise_dim = z.shape[1]
    cond_dim = cond_info.shape[1]
    hidden = w1z.shape[1]
    out_dim = w2.shape[1]

    z = z.astype(jnp.float32)
    cond_info = cond_info.astype(jnp.float32)

    # Batch tile: multiple of 8 sublanes, double-buffered per-tile VMEM footprint stays
    # tiny (~(noise+cond+out)*4B per row), well under the 32 MiB scoped limit on v7x.
    tb = min(block_batch, _round_up(batch, 8))
    padded = _round_up(batch, tb)
    if padded != batch:
        z = jnp.pad(z, ((0, padded - batch), (0, 0)))
        cond_info = jnp.pad(cond_info, ((0, padded - batch), (0, 0)))

    grid = (padded // tb,)

    flops = 2 * batch * (noise_dim + cond_dim) * hidden + 2 * batch * hidden * out_dim
    bytes_accessed = 4 * (batch * (noise_dim + cond_dim + out_dim)
                          + w1z.size + w1c.size + b1.size + w2.size + b2.size)
    cost = pl.CostEstimate(flops=int(flops), transcendentals=0,
                           bytes_accessed=int(bytes_accessed))

    out = pl.pallas_call(
        _generator_mlp_kernel,
        out_shape=jax.ShapeDtypeStruct((padded, out_dim), jnp.float32),
        grid_spec=pltpu.PrefetchScalarGridSpec(
            num_scalar_prefetch=0,
            grid=grid,
            in_specs=[
                # Batch-tiled activations (pipelined / double-buffered).
                pl.BlockSpec((tb, noise_dim), lambda i: (i, 0)),
                pl.BlockSpec((tb, cond_dim), lambda i: (i, 0)),
                # Weights & biases: whole-array blocks, constant index_map -> resident
                # in VMEM across all grid steps.
                pl.BlockSpec((noise_dim, hidden), lambda i: (0, 0)),
                pl.BlockSpec((cond_dim, hidden), lambda i: (0, 0)),
                pl.BlockSpec((1, hidden), lambda i: (0, 0)),
                pl.BlockSpec((hidden, out_dim), lambda i: (0, 0)),
                pl.BlockSpec((1, out_dim), lambda i: (0, 0)),
            ],
            out_specs=pl.BlockSpec((tb, out_dim), lambda i: (i, 0)),
        ),
        compiler_params=pltpu.CompilerParams(dimension_semantics=("parallel",)),
        cost_estimate=cost,
    )(z, cond_info, w1z, w1c, b1, w2, b2)

    return out[:batch] if padded != batch else out


def init_generator_params(key, cond_dim, noise_dim, output_dim, hidden=50):
    """Deterministic init mirroring nn.Linear defaults (uniform +/- 1/sqrt(fan_in)),
    in the raw (unsplit, unpadded) [in, out] parametrization."""
    in_dim = cond_dim + noise_dim
    k1, k2, k3, k4 = jax.random.split(key, 4)
    lim1 = 1.0 / jnp.sqrt(in_dim)
    lim2 = 1.0 / jnp.sqrt(hidden)
    return {
        "w1": jax.random.uniform(k1, (in_dim, hidden), jnp.float32, -lim1, lim1),
        "b1": jax.random.uniform(k2, (hidden,), jnp.float32, -lim1, lim1),
        "w2": jax.random.uniform(k3, (hidden, output_dim), jnp.float32, -lim2, lim2),
        "b2": jax.random.uniform(k4, (output_dim,), jnp.float32, -lim2, lim2),
    }


def _reference(z, cond_info, raw):
    x = jnp.concatenate([z, cond_info], axis=1).astype(jnp.float32)
    h = jnp.maximum(x @ raw["w1"] + raw["b1"], 0.0)
    return h @ raw["w2"] + raw["b2"]


if __name__ == "__main__":
    cond_dim, noise_dim, output_dim = 4, 4, 8

    key = jax.random.PRNGKey(0)
    kz, kc, kp, kz2, kc2 = jax.random.split(key, 5)

    raw = init_generator_params(kp, cond_dim, noise_dim, output_dim)
    params = prepare_generator_params(raw, noise_dim)   # one-time split/pad/cast

    # Small shape consistent with the module's forward pass.
    batch = 8
    z = jax.random.normal(kz, (batch, noise_dim), jnp.float32)
    cond_info = jax.random.normal(kc, (batch, cond_dim), jnp.float32)
    out = generator_forward(z, cond_info, params)
    jax.block_until_ready(out)
    assert out.shape == (batch, output_dim)
    assert jnp.allclose(out, _reference(z, cond_info, raw), atol=1e-5, rtol=1e-5)

    # Larger, non-tile-multiple batch to exercise the batch grid + padding path.
    batch2 = 300
    z2 = jax.random.normal(kz2, (batch2, noise_dim), jnp.float32)
    cond2 = jax.random.normal(kc2, (batch2, cond_dim), jnp.float32)
    out2 = generator_forward(z2, cond2, params, block_batch=64)
    jax.block_until_ready(out2)
    assert out2.shape == (batch2, output_dim)
    assert jnp.allclose(out2, _reference(z2, cond2, raw), atol=1e-5, rtol=1e-5)

    print("KERNEL_OK")
</pallas_src>

<mosaic_0001>
module attributes {stable_mosaic.version = 11 : i64} {
  func.func @_generator_mlp_kernel(%arg0: i32, %arg1: memref<8x4xf32, #tpu.memory_space<vmem>>, %arg2: memref<8x4xf32, #tpu.memory_space<vmem>>, %arg3: memref<4x128xf32, #tpu.memory_space<vmem>>, %arg4: memref<4x128xf32, #tpu.memory_space<vmem>>, %arg5: memref<1x128xf32, #tpu.memory_space<vmem>>, %arg6: memref<128x8xf32, #tpu.memory_space<vmem>>, %arg7: memref<1x8xf32, #tpu.memory_space<vmem>>, %arg8: memref<8x8xf32, #tpu.memory_space<vmem>>) attributes {dimension_semantics = [#tpu.dimension_semantics<parallel>], iteration_bounds = array<i64: 1>, scalar_prefetch = 0 : i64, scratch_operands = 0 : i64, tpu.core_type = #tpu.core_type<tc>, window_params = [{transform_indices = @transform_0, window_bounds = array<i64: 8, 4>}, {transform_indices = @transform_1, window_bounds = array<i64: 8, 4>}, {pipeline_mode = #tpu.pipeline_mode<synchronous>, transform_indices = @transform_2, window_bounds = array<i64: 4, 128>}, {pipeline_mode = #tpu.pipeline_mode<synchronous>, transform_indices = @transform_3, window_bounds = array<i64: 4, 128>}, {pipeline_mode = #tpu.pipeline_mode<synchronous>, transform_indices = @transform_4, window_bounds = array<i64: 1, 128>}, {pipeline_mode = #tpu.pipeline_mode<synchronous>, transform_indices = @transform_5, window_bounds = array<i64: 128, 8>}, {pipeline_mode = #tpu.pipeline_mode<synchronous>, transform_indices = @transform_6, window_bounds = array<i64: 1, 8>}, {transform_indices = @transform_7, window_bounds = array<i64: 8, 8>}]} {
    %c0 = arith.constant 0 : index
    %c0_0 = arith.constant 0 : index
    %0 = vector.load %arg1[%c0, %c0_0] : memref<8x4xf32, #tpu.memory_space<vmem>>, vector<8x4xf32>
    %c0_1 = arith.constant 0 : index
    %c0_2 = arith.constant 0 : index
    %1 = vector.load %arg3[%c0_1, %c0_2] : memref<4x128xf32, #tpu.memory_space<vmem>>, vector<4x128xf32>
    %cst = arith.constant dense<0.000000e+00> : vector<8x128xf32>
    %2 = tpu.matmul %0, %1, %cst {dimension_numbers = #tpu.dot_dimension_numbers<[1], [0], [0], [1], [0, 0, 1, 1], [], []>} : vector<8x4xf32>, vector<4x128xf32>, vector<8x128xf32> -> vector<8x128xf32>
    %c0_3 = arith.constant 0 : index
    %c0_4 = arith.constant 0 : index
    %3 = vector.load %arg2[%c0_3, %c0_4] : memref<8x4xf32, #tpu.memory_space<vmem>>, vector<8x4xf32>
    %c0_5 = arith.constant 0 : index
    %c0_6 = arith.constant 0 : index
    %4 = vector.load %arg4[%c0_5, %c0_6] : memref<4x128xf32, #tpu.memory_space<vmem>>, vector<4x128xf32>
    %cst_7 = arith.constant dense<0.000000e+00> : vector<8x128xf32>
    %5 = tpu.matmul %3, %4, %cst_7 {dimension_numbers = #tpu.dot_dimension_numbers<[1], [0], [0], [1], [0, 0, 1, 1], [], []>} : vector<8x4xf32>, vector<4x128xf32>, vector<8x128xf32> -> vector<8x128xf32>
    %6 = arith.addf %2, %5 : vector<8x128xf32>
    %c0_8 = arith.constant 0 : index
    %c0_9 = arith.constant 0 : index
    %7 = vector.load %arg5[%c0_8, %c0_9] : memref<1x128xf32, #tpu.memory_space<vmem>>, vector<1x128xf32>
    %8 = vector.broadcast %7 : vector<1x128xf32> to vector<8x128xf32>
    %9 = arith.addf %6, %8 : vector<8x128xf32>
    %cst_10 = arith.constant 0.000000e+00 : f32
    %10 = vector.broadcast %cst_10 : f32 to vector<8x128xf32>
    %11 = arith.maximumf %9, %10 : vector<8x128xf32>
    %c0_11 = arith.constant 0 : index
    %c0_12 = arith.constant 0 : index
    %12 = vector.load %arg6[%c0_11, %c0_12] : memref<128x8xf32, #tpu.memory_space<vmem>>, vector<128x8xf32>
    %cst_13 = arith.constant dense<0.000000e+00> : vector<8x8xf32>
    %13 = tpu.matmul %11, %12, %cst_13 {dimension_numbers = #tpu.dot_dimension_numbers<[1], [0], [0], [1], [0, 0, 1, 1], [], []>} : vector<8x128xf32>, vector<128x8xf32>, vector<8x8xf32> -> vector<8x8xf32>
    %c0_14 = arith.constant 0 : index
    %c0_15 = arith.constant 0 : index
    %14 = vector.load %arg7[%c0_14, %c0_15] : memref<1x8xf32, #tpu.memory_space<vmem>>, vector<1x8xf32>
    %15 = vector.broadcast %14 : vector<1x8xf32> to vector<8x8xf32>
    %16 = arith.addf %13, %15 : vector<8x8xf32>
    %c0_16 = arith.constant 0 : index
    %c0_17 = arith.constant 0 : index
    %17 = vector.load %arg8[%c0_16, %c0_17] : memref<8x8xf32, #tpu.memory_space<vmem>>, vector<8x8xf32>
    tpu.vector_store %arg8[%c0_16, %c0_17], %16 {strides = array<i32>} : memref<8x8xf32, #tpu.memory_space<vmem>>, vector<8x8xf32>,
    return
  }
  func.func @transform_0(%arg0: i32) -> (i32, i32) {
    %c0_i32 = arith.constant 0 : i32
    %c0_i32_0 = arith.constant 0 : i32
    return %arg0, %c0_i32 : i32, i32
  }
  func.func @transform_1(%arg0: i32) -> (i32, i32) {
    %c0_i32 = arith.constant 0 : i32
    %c0_i32_0 = arith.constant 0 : i32
    return %arg0, %c0_i32 : i32, i32
  }
  func.func @transform_2(%arg0: i32) -> (i32, i32) {
    %c0_i32 = arith.constant 0 : i32
    %c0_i32_0 = arith.constant 0 : i32
    %c0_i32_1 = arith.constant 0 : i32
    return %c0_i32, %c0_i32_0 : i32, i32
  }
  func.func @transform_3(%arg0: i32) -> (i32, i32) {
    %c0_i32 = arith.constant 0 : i32
    %c0_i32_0 = arith.constant 0 : i32
    %c0_i32_1 = arith.constant 0 : i32
    return %c0_i32, %c0_i32_0 : i32, i32
  }
  func.func @transform_4(%arg0: i32) -> (i32, i32) {
    %c0_i32 = arith.constant 0 : i32
    %c0_i32_0 = arith.constant 0 : i32
    %c0_i32_1 = arith.constant 0 : i32
    return %c0_i32, %c0_i32_0 : i32, i32
  }
  func.func @transform_5(%arg0: i32) -> (i32, i32) {
    %c0_i32 = arith.constant 0 : i32
    %c0_i32_0 = arith.constant 0 : i32
    %c0_i32_1 = arith.constant 0 : i32
    return %c0_i32, %c0_i32_0 : i32, i32
  }
  func.func @transform_6(%arg0: i32) -> (i32, i32) {
    %c0_i32 = arith.constant 0 : i32
    %c0_i32_0 = arith.constant 0 : i32
    %c0_i32_1 = arith.constant 0 : i32
    return %c0_i32, %c0_i32_0 : i32, i32
  }
  func.func @transform_7(%arg0: i32) -> (i32, i32) {
    %c0_i32 = arith.constant 0 : i32
    %c0_i32_0 = arith.constant 0 : i32
    return %arg0, %c0_i32 : i32, i32
  }
}

</mosaic_0001>

<bundles_post_ra>
// kernel: tpu_custom_call.1
= control target key start
LH: loop header
LB: loop body
LE: loop exit
PB: predicated region body
PF: predicated region fallthrough
CT: control target
= control target key end

     0   :  { %vm35_vm0 = vcmask 1043456   ;;  %v400_v2 = vmov 0.0   ;;  %vm401_vm1 = vmmov 0   ;;  %vm31_vm2 = vcmask 31744   ;;  %s514_s0 = inlined_call_operand.vmem [shape: f32[8,4], index: 0, kind: input, shape index: {}]   ;;  %s515_s1 = inlined_call_operand.vmem [shape: f32[8,4], index: 1, kind: input, shape index: {}]   ;;  %s516_s2 = inlined_call_operand.vmem [shape: f32[4,128], index: 2, kind: input, shape index: {}]   ;;  %s517_s3 = inlined_call_operand.vmem [shape: f32[4,128], index: 3, kind: input, shape index: {}]   ;;  %s518_s4 = inlined_call_operand.vmem [shape: f32[1,128], index: 4, kind: input, shape index: {}]   ;;  %s519_s5 = inlined_call_operand.vmem [shape: f32[128,8], index: 5, kind: input, shape index: {}]   ;;  %s520_s6 = inlined_call_operand.vmem [shape: f32[1,8], index: 6, kind: input, shape index: {}]   ;;  %s521_s7 = inlined_call_operand.hbm [shape: f32[8,8], index: 7, kind: output, shape index: {}]  }
   0x1   :  { %v30_v0 = vld [vmem:[%s517_s3] sm:$0xf]  ;;  %330 = vmatprep.subr.mxu1 %v400_v2  ;;  %332 = vmatprep.mubr.msk.f32.mxu1 %vm401_vm1, %v400_v2  ;;  %v209_v4 = vld [vmem:[%s519_s5 + $0x78] sm:$0xff]  ;;  %v208_v6 = vld [vmem:[%s519_s5 + $0x70] sm:$0xff] }
   0x2   :  { %v29_v1 = vld [vmem:[%s515_s1] sm:$0xff]  ;;  %331 = vmatpush3.msk.msra.mxu1 %vm35_vm0, %v30_v0  ;;  %340 = vmatprep.subr.mxu0 %v400_v2 }
   0x3   :  { %v28_v3 = vld [vmem:[%s516_s2] sm:$0xf]  ;;  %333 = vmatmul.mubr.msk.f32.vlgmr.msra.gmra.mxu1 %vm31_vm2, %v29_v1  ;;  %335 = vmatprep.subr.mxu1 %v400_v2 }
   0x4   :  { %336 = vmatpush3.msk.msra.mxu1 %vm35_vm0, %v28_v3  ;;  %337 = vmatprep.mubr.msk.f32.mxu1 %vm401_vm1, %v400_v2  ;;  %v27_v5 = vld [vmem:[%s514_s0] sm:$0xff] }
   0x5   :  { %341 = vmatpush3.msra.mxu0 %v209_v4  ;;  %372 = vmatprep.mubr.msk.f32.mxu0 %vm401_vm1, %v400_v2 }
   0x6   :  { %12 = vsyncpa [#allocation3], 0  ;;  %342 = vmatprep.subr.mxu0 %v400_v2  ;;  %v207_v7 = vld [vmem:[%s519_s5 + $0x68] sm:$0xff]  ;;  %v206_v8 = vld [vmem:[%s519_s5 + $0x60] sm:$0xff]  ;;  %s402_s14 = smov [#allocation2]   ;;  %vm287_vm3 = vcmask 64512  }
   0x7   :  { %338 = vmatmul.mubr.msk.f32.vlgmr.msra.gmra.mxu1 %vm31_vm2, %v27_v5  ;;  %343 = vmatpush3.msra.mxu0 %v208_v6  ;;  %v205_v9 = vld [vmem:[%s519_s5 + $0x58] sm:$0xff]  ;;  %v204_v10 = vld [vmem:[%s519_s5 + $0x50] sm:$0xff]  ;;  %v203_v11 = vld [vmem:[%s519_s5 + $0x48] sm:$0xff]  ;;  %s295_s15 = sshll.u32 %s402_s14, 4  ;;  %s296_s15 = int_to_ptr.vmem [resolvable:$true] %s295_s15 }
   0x8   :  { %344 = vmatprep.subr.mxu0 %v400_v2  ;;  %v202_v12 = vld [vmem:[%s519_s5 + $0x40] sm:$0xff]  ;;  %v201_v13 = vld [vmem:[%s519_s5 + $0x38] sm:$0xff]  ;;  %v200_v14 = vld [vmem:[%s519_s5 + $0x30] sm:$0xff]  ;;  %p383_p1 = scmp.lt.s32.totalorder %s296_s15, %s296_s15 }
   0x9   :  { %345 = vmatpush3.msra.mxu0 %v207_v7  ;;  %v199_v15 = vld [vmem:[%s519_s5 + $0x28] sm:$0xff]  ;;  %v198_v16 = vld [vmem:[%s519_s5 + $0x20] sm:$0xff]  ;;  %v197_v17 = vld [vmem:[%s519_s5 + $0x18] sm:$0xff] }
   0xa   :  { %346 = vmatprep.subr.mxu0 %v400_v2  ;;  %v196_v18 = vld [vmem:[%s519_s5 + $0x10] sm:$0xff]  ;;  %v195_v19 = vld [vmem:[%s519_s5 + $0x8] sm:$0xff]  ;;  %v194_v20 = vld [vmem:[%s519_s5] sm:$0xff]  ;;  %s378_s5 = scalar_lea.vmem %s296_s15, 128 }
   0xb   :  { %347 = vmatpush3.msra.mxu0 %v206_v8  ;;  %v307_v24 = vld [vmem:[%s518_s4] ss:$0 sm:$0xff]  ;;  %p379_p0 = scmp.ne.s32.totalorder %s296_s15, %s378_s5  ;;  %p384_p2 = scmp.lt.s32.totalorder %s378_s5, %s378_s5 }
   0xc   :  { %348 = vmatprep.subr.mxu0 %v400_v2  ;;  %v308_v29 = vld [vmem:[%s520_s6] ss:$0 sm:$0xff] }
   0xd   :  { %349 = vmatpush3.msra.mxu0 %v205_v9  ;;  %p385_p3 = por %p384_p2, %p383_p1 }
   0xe   :  { %350 = vmatprep.subr.mxu0 %v400_v2 }
   0xf   :  { %351 = vmatpush3.msra.mxu0 %v204_v10  ;;  %p386_p4 = pnand %p385_p3, %p379_p0 }
  0x10   :  { %352 = vmatprep.subr.mxu0 %v400_v2 }
  0x11   :  { %353 = vmatpush3.msra.mxu0 %v203_v11 }
  0x12   :  { %354 = vmatprep.subr.mxu0 %v400_v2 }
  0x13   :  { %355 = vmatpush3.msra.mxu0 %v202_v12 }
  0x14   :  { %356 = vmatprep.subr.mxu0 %v400_v2 }
  0x15   :  { %357 = vmatpush3.msra.mxu0 %v201_v13 }
  0x16   :  { %358 = vmatprep.subr.mxu0 %v400_v2 }
  0x17   :  { %359 = vmatpush3.msra.mxu0 %v200_v14 }
  0x18   :  { %360 = vmatprep.subr.mxu0 %v400_v2 }
  0x19   :  { %361 = vmatpush3.msra.mxu0 %v199_v15 }
  0x1a   :  { %362 = vmatprep.subr.mxu0 %v400_v2 }
  0x1b   :  { %363 = vmatpush3.msra.mxu0 %v198_v16 }
  0x1c   :  { %364 = vmatprep.subr.mxu0 %v400_v2 }
  0x1d   :  { %365 = vmatpush3.msra.mxu0 %v197_v17 }
  0x1e   :  { %366 = vmatprep.subr.mxu0 %v400_v2 }
  0x1f   :  { %367 = vmatpush3.msra.mxu0 %v196_v18 }
  0x20   :  { %368 = vmatprep.subr.mxu0 %v400_v2 }
  0x21   :  { %369 = vmatpush3.msra.mxu0 %v195_v19 }
  0x22   :  { %370 = vmatprep.subr.mxu0 %v400_v2 }
  0x23   :  { %371 = vmatpush3.msra.mxu0 %v194_v20 }
  0xc3   :  { %v105_v21 = vpop.f32.mrf.mxu1 }
  0xc5   :  { %v334_v22 = vpop.f32.mrf.mxu1 }
  0xc7   :  { %v181_v23 = vpop.f32.mrf.mxu1 }
  0xc8   :  { %v182_v25 = vadd.f32 %v181_v23, %v105_v21 }
  0xc9   :  { %v339_v26 = vpop.f32.mrf.mxu1 }
  0xca   :  { %v192_v27 = vadd.f32 %v307_v24, %v182_v25 }
  0xcc   :  { %v193_v28 = vmax.f32 %v192_v27, 0.0 }
  0xce   :  { %373 = vmatmul.mubr.f32.vlgmr.msra.gmra.mxu0 %v193_v28 }
 0x18e   :  { %v283_v30 = vpop.f32.mrf.mxu0 }
 0x18f   :  { %v284_v31 = vadd.f32 %v308_v29, %v283_v30 }
 0x190   :  { %v374_v32 = vpop.f32.mrf.mxu0 }
 0x191   :  { %288 = vst.msk [vmem:[#allocation2] sm:$0xff] %vm287_vm3, %v284_v31 }
 0x192   :  { %389 = shalt.err (!%p386_p4)
}
 0x193   :  { %298 = dma.vmem_to_hbm [thread:$0]  %s296_s15, 128, %s521_s7, [#allocation3]  }
 0x194   :  { %398 = dma.done.wait [#allocation3], 128  }
 0x195   :  { %399 = vsyncadd [#allocation3], 4294967168 }
 0x196   :  { %302 = vsyncpa [#allocation3], 1 }

</bundles_post_ra>
